<compile_context>
chip_gen: v7x
topology: tpu7x:2x2x1
jax: 0.10.0
libtpu: 0.0.40
codegen_flags: <defaults>
</compile_context>

<pallas_src>
import math
import functools

import jax
import jax.numpy as jnp
from jax.experimental import pallas as pl
from jax.experimental.pallas import tpu as pltpu


# ----------------------------------------------------------------------------
# helpers
# ----------------------------------------------------------------------------

_VMEM_LIMIT = 32 * 1024 * 1024  # explicit scoped-VMEM request (fits v5e/v6e/v7x)


def _layer_norm(x, gamma, beta, eps=1e-5):
    # torch.nn.LayerNorm: biased variance over the last dim, eps inside rsqrt.
    mean = jnp.mean(x, axis=-1, keepdims=True)
    var = jnp.mean(jnp.square(x - mean), axis=-1, keepdims=True)
    return (x - mean) * jax.lax.rsqrt(var + eps) * gamma + beta


def _row_tile(rows):
    # Full extent for small inputs, otherwise 512-row tiles (multiple of 8 sublanes,
    # a few MiB per double-buffered block -> well inside every TPU generation's VMEM).
    return rows if rows <= 512 else 512


# ----------------------------------------------------------------------------
# kernel 1: input embedding + positional encoding (+ optional dropout)
# ----------------------------------------------------------------------------

def _embed_pe_kernel(x_ref, pe_ref, w_ref, b_ref, o_ref):
    # x_ref: (1, tl, Fin), pe_ref: (tl, D), w_ref: (Fin, D), b_ref: (1, D)
    y = jnp.dot(x_ref[0], w_ref[...], preferred_element_type=jnp.float32)
    o_ref[0] = (y + b_ref[...] + pe_ref[...]).astype(o_ref.dtype)


def _embed_pe_dropout_kernel(seed_ref, x_ref, pe_ref, w_ref, b_ref, o_ref,
                             *, p, tl, n_row_tiles):
    # Training mode: inverted dropout.  Counter-based hash keyed on a GLOBAL
    # (row, col) position + seed so the mask is independent of the tiling.
    # TODO(synk): RNG stream cannot bit-match torch.nn.Dropout; Bernoulli keep-mask
    # + 1/(1-p) rescale semantics are reproduced instead.
    y = (jnp.dot(x_ref[0], w_ref[...], preferred_element_type=jnp.float32)
         + b_ref[...] + pe_ref[...])

    base = ((pl.program_id(0) * n_row_tiles + pl.program_id(1)) * tl).astype(jnp.uint32)
    rows = jax.lax.broadcasted_iota(jnp.uint32, y.shape, 0) + base
    cols = jax.lax.broadcasted_iota(jnp.uint32, y.shape, 1)
    h = (rows * jnp.uint32(0x9E3779B1)
         + cols * jnp.uint32(0x85EBCA6B)
         + seed_ref[0].astype(jnp.uint32))
    # murmur-style finalizer mix
    h = h ^ (h >> 16)
    h = h * jnp.uint32(0x7FEB352D)
    h = h ^ (h >> 15)
    h = h * jnp.uint32(0x846CA68B)
    h = h ^ (h >> 16)

    u31 = (h >> 1).astype(jnp.int32)                       # uniform in [0, 2^31)
    thresh = jnp.int32(int(round(p * 2147483648.0)))
    keep = (u31 >= thresh).astype(y.dtype)
    scale = jnp.asarray(1.0 / (1.0 - p), y.dtype)
    o_ref[0] = (y * keep * scale).astype(o_ref.dtype)


# ----------------------------------------------------------------------------
# kernel 2: full encoder stack (post-norm, ReLU FFN) — one pallas_call for all
#           layers; activations resident in VMEM across the layer axis.
# ----------------------------------------------------------------------------

def _encoder_stack_kernel(h_ref, wqkv_ref, bqkv_ref, wo_ref, bo_ref,
                          g1_ref, be1_ref, w1_ref, b1_ref, w2_ref, b2_ref,
                          g2_ref, be2_ref, o_ref, *, num_heads, head_dim):
    # grid = (batch, layer).  On layer 0 copy the embedded input into the resident
    # output block; later layers read/modify it in place.
    @pl.when(pl.program_id(1) == 0)
    def _():
        o_ref[...] = h_ref[...]

    x = o_ref[0].astype(jnp.float32)                       # (L, D)
    d_model = num_heads * head_dim

    qkv = jnp.dot(x, wqkv_ref[0], preferred_element_type=jnp.float32) + bqkv_ref[0]
    q = qkv[:, :d_model]
    k = qkv[:, d_model:2 * d_model]
    v = qkv[:, 2 * d_model:]

    scale = 1.0 / math.sqrt(head_dim)
    heads = []
    for hh in range(num_heads):
        sl = slice(hh * head_dim, (hh + 1) * head_dim)
        qh = q[:, sl] * scale
        s = jax.lax.dot_general(qh, k[:, sl], (((1,), (1,)), ((), ())),
                                preferred_element_type=jnp.float32)   # (L, L)
        s = s - jnp.max(s, axis=-1, keepdims=True)
        e = jnp.exp(s)
        a = e / jnp.sum(e, axis=-1, keepdims=True)
        heads.append(jnp.dot(a, v[:, sl], preferred_element_type=jnp.float32))
    attn = jnp.concatenate(heads, axis=-1)                 # (L, D)
    attn = jnp.dot(attn, wo_ref[0], preferred_element_type=jnp.float32) + bo_ref[0]

    # TODO(synk): training-mode attention / residual / FFN dropout not implemented
    # in this kernel (eval semantics: dropout == identity).
    y = _layer_norm(x + attn, g1_ref[0], be1_ref[0])

    hdn = jnp.maximum(
        jnp.dot(y, w1_ref[0], preferred_element_type=jnp.float32) + b1_ref[0], 0.0)
    y2 = jnp.dot(hdn, w2_ref[0], preferred_element_type=jnp.float32) + b2_ref[0]
    o_ref[0] = _layer_norm(y + y2, g2_ref[0], be2_ref[0]).astype(o_ref.dtype)


# ----------------------------------------------------------------------------
# kernel 3: GatedResidualNetwork (+ GLU) fused with the output Linear
# ----------------------------------------------------------------------------

def _grn_output_kernel(z_ref, w1_ref, b1_ref, w2_ref, b2_ref,
                       wg1_ref, bg1_ref, wg2_ref, bg2_ref,
                       g_ref, be_ref, wo_ref, bo_ref, o_ref):
    z = z_ref[...]                                         # (tm, D)

    h = jnp.dot(z, w1_ref[...], preferred_element_type=jnp.float32) + b1_ref[...]
    h = jnp.where(h > 0, h, jnp.exp(jnp.minimum(h, 0.0)) - 1.0)        # ELU(alpha=1)
    # TODO(synk): training-mode dropout inside the GRN not implemented (eval semantics).
    h = jnp.dot(h, w2_ref[...], preferred_element_type=jnp.float32) + b2_ref[...]

    a1 = jnp.dot(z, wg1_ref[...], preferred_element_type=jnp.float32) + bg1_ref[...]
    a2 = jnp.dot(z, wg2_ref[...], preferred_element_type=jnp.float32) + bg2_ref[...]
    glu = (1.0 / (1.0 + jnp.exp(-a1))) * a2

    y = _layer_norm(h + glu, g_ref[...], be_ref[...])
    out = jnp.dot(y, wo_ref[...], preferred_element_type=jnp.float32) + bo_ref[...]
    o_ref[...] = out.astype(o_ref.dtype)


# ----------------------------------------------------------------------------
# module wrapper
# ----------------------------------------------------------------------------

class TemporalFusionTransformer:
    """Pallas port of the PyTorch TemporalFusionTransformer forward pass."""

    def __init__(self, input_size, output_size, output_length, num_layers,
                 d_model, num_heads, dropout=0.1, max_len=5000, *,
                 key, dtype=jnp.float32):
        assert d_model % 2 == 0, "sinusoidal PE requires an even d_model"
        assert d_model % num_heads == 0
        self.input_size = input_size
        self.output_size = output_size
        self.output_length = output_length
        self.d_model = d_model
        self.num_heads = num_heads
        self.num_layers = num_layers
        self.dim_feedforward = 4 * d_model
        self.p = float(dropout)
        self.dtype = dtype

        # sinusoidal PE table, pre-cast to the activation dtype (no in-kernel cast)
        pos = jnp.arange(max_len, dtype=jnp.float32)[:, None]
        div = jnp.exp(jnp.arange(0, d_model, 2, dtype=jnp.float32)
                      * (-math.log(10000.0) / d_model))
        pe = jnp.zeros((max_len, d_model), jnp.float32)
        pe = pe.at[:, 0::2].set(jnp.sin(pos * div))
        pe = pe.at[:, 1::2].set(jnp.cos(pos * div))
        self.pe = pe.astype(dtype)

        keys = iter(jax.random.split(key, 16 + 8 * num_layers))

        def linear(fan_in, fan_out):
            bound = 1.0 / math.sqrt(fan_in)
            w = jax.random.uniform(next(keys), (fan_in, fan_out), dtype, -bound, bound)
            b = jax.random.uniform(next(keys), (1, fan_out), dtype, -bound, bound)
            return w, b

        self.emb_w, self.emb_b = linear(input_size, d_model)

        # per-layer encoder params, stacked along a leading layer axis so a single
        # pallas_call streams them per grid step.
        F = self.dim_feedforward
        acc = {k: [] for k in ("wqkv", "bqkv", "wo", "bo", "w1", "b1", "w2", "b2")}
        for _ in range(num_layers):
            wqkv, bqkv = linear(d_model, 3 * d_model)
            wo, bo = linear(d_model, d_model)
            w1, b1 = linear(d_model, F)
            w2, b2 = linear(F, d_model)
            for k, v in (("wqkv", wqkv), ("bqkv", bqkv), ("wo", wo), ("bo", bo),
                         ("w1", w1), ("b1", b1), ("w2", w2), ("b2", b2)):
                acc[k].append(v)
        self.enc = {k: jnp.stack(v) for k, v in acc.items()}
        self.enc["g1"] = jnp.ones((num_layers, 1, d_model), dtype)
        self.enc["be1"] = jnp.zeros((num_layers, 1, d_model), dtype)
        self.enc["g2"] = jnp.ones((num_layers, 1, d_model), dtype)
        self.enc["be2"] = jnp.zeros((num_layers, 1, d_model), dtype)

        gw1, gb1 = linear(d_model, d_model)
        gw2, gb2 = linear(d_model, d_model)
        ggw1, ggb1 = linear(d_model, d_model)
        ggw2, ggb2 = linear(d_model, d_model)
        self.grn = dict(w1=gw1, b1=gb1, w2=gw2, b2=gb2,
                        wg1=ggw1, bg1=ggb1, wg2=ggw2, bg2=ggb2,
                        g=jnp.ones((1, d_model), dtype),
                        be=jnp.zeros((1, d_model), dtype))
        self.out_w, self.out_b = linear(d_model, output_size * output_length)

    # -- kernel call helpers --------------------------------------------------

    def _embed_pe(self, x_nlf, pe_l, *, training, seed):
        N, L, Fin = x_nlf.shape
        D = self.d_model
        tl = _row_tile(L)
        nt = pl.cdiv(L, tl)
        grid = (N, nt)
        in_specs = [
            pl.BlockSpec((1, tl, Fin), lambda n, i, *_: (n, i, 0)),
            pl.BlockSpec((tl, D), lambda n, i, *_: (i, 0)),
            pl.BlockSpec((Fin, D), lambda n, i, *_: (0, 0)),
            pl.BlockSpec((1, D), lambda n, i, *_: (0, 0)),
        ]
        out_spec = pl.BlockSpec((1, tl, D), lambda n, i, *_: (n, i, 0))
        out_shape = jax.ShapeDtypeStruct((N, L, D), x_nlf.dtype)
        cparams = pltpu.CompilerParams(dimension_semantics=("parallel", "parallel"),
                                       vmem_limit_bytes=_VMEM_LIMIT)

        if training and self.p > 0.0:
            kern = functools.partial(_embed_pe_dropout_kernel, p=self.p, tl=tl,
                                     n_row_tiles=nt)
            return pl.pallas_call(
                kern, out_shape=out_shape,
                grid_spec=pltpu.PrefetchScalarGridSpec(
                    num_scalar_prefetch=1, grid=grid,
                    in_specs=in_specs, out_specs=out_spec),
                compiler_params=cparams,
            )(jnp.array([seed], jnp.int32), x_nlf, pe_l, self.emb_w, self.emb_b)

        return pl.pallas_call(
            _embed_pe_kernel, out_shape=out_shape,
            grid_spec=pltpu.PrefetchScalarGridSpec(
                num_scalar_prefetch=0, grid=grid,
                in_specs=in_specs, out_specs=out_spec),
            compiler_params=cparams,
        )(x_nlf, pe_l, self.emb_w, self.emb_b)

    def _encoder_stack(self, h):
        N, L, D = h.shape
        F = self.dim_feedforward
        nl = self.num_layers
        ep = self.enc

        def w_spec(a, b):
            # stacked (num_layers, a, b) parameter, streamed one layer per grid step
            return pl.BlockSpec((1, a, b), lambda bb, ll: (ll, 0, 0))

        kern = functools.partial(_encoder_stack_kernel,
                                 num_heads=self.num_heads,
                                 head_dim=D // self.num_heads)
        in_specs = [
            pl.BlockSpec((1, L, D), lambda bb, ll: (bb, 0, 0)),
            w_spec(D, 3 * D), w_spec(1, 3 * D),
            w_spec(D, D), w_spec(1, D),
            w_spec(1, D), w_spec(1, D),
            w_spec(D, F), w_spec(1, F),
            w_spec(F, D), w_spec(1, D),
            w_spec(1, D), w_spec(1, D),
        ]
        return pl.pallas_call(
            kern,
            out_shape=jax.ShapeDtypeStruct((N, L, D), h.dtype),
            grid_spec=pltpu.PrefetchScalarGridSpec(
                num_scalar_prefetch=0, grid=(N, nl),
                in_specs=in_specs,
                out_specs=pl.BlockSpec((1, L, D), lambda bb, ll: (bb, 0, 0))),
            compiler_params=pltpu.CompilerParams(
                dimension_semantics=("parallel", "arbitrary"),
                vmem_limit_bytes=_VMEM_LIMIT),
        )(h, ep["wqkv"], ep["bqkv"], ep["wo"], ep["bo"],
          ep["g1"], ep["be1"], ep["w1"], ep["b1"], ep["w2"], ep["b2"],
          ep["g2"], ep["be2"])

    def _grn_output(self, z):
        L, D = z.shape
        O = self.output_size * self.output_length
        gp = self.grn
        tm = _row_tile(L)
        grid = (pl.cdiv(L, tm),)

        def w_spec(shape):
            nd = len(shape)
            return pl.BlockSpec(shape, lambda i: (0,) * nd)

        in_specs = [
            pl.BlockSpec((tm, D), lambda i: (i, 0)),
            w_spec((D, D)), w_spec((1, D)),
            w_spec((D, D)), w_spec((1, D)),
            w_spec((D, D)), w_spec((1, D)),
            w_spec((D, D)), w_spec((1, D)),
            w_spec((1, D)), w_spec((1, D)),
            w_spec((D, O)), w_spec((1, O)),
        ]
        return pl.pallas_call(
            _grn_output_kernel,
            out_shape=jax.ShapeDtypeStruct((L, O), z.dtype),
            grid_spec=pltpu.PrefetchScalarGridSpec(
                num_scalar_prefetch=0, grid=grid,
                in_specs=in_specs,
                out_specs=pl.BlockSpec((tm, O), lambda i: (i, 0))),
            compiler_params=pltpu.CompilerParams(
                dimension_semantics=("parallel",), vmem_limit_bytes=_VMEM_LIMIT),
        )(z, gp["w1"], gp["b1"], gp["w2"], gp["b2"],
          gp["wg1"], gp["bg1"], gp["wg2"], gp["bg2"],
          gp["g"], gp["be"], self.out_w, self.out_b)

    # -- full forward ----------------------------------------------------------

    def __call__(self, x, *, training=False, seed=0):
        L, N, Fin = x.shape
        assert Fin == self.input_size

        # (L, N, Fin) -> (N, L, Fin): cheap transpose of the *input* so every kernel
        # sees batch-major activations (no activation-sized transposes or PE repeats).
        x_nlf = jnp.transpose(x, (1, 0, 2))

        # 1. fused input_embedding + positional_encoding (+ dropout)
        h = self._embed_pe(x_nlf, self.pe[:L], training=training, seed=seed)  # (N,L,D)

        # 2. all transformer encoder layers in one pallas_call (activations resident)
        h = self._encoder_stack(h)                                            # (N,L,D)

        # 3. x[:, -1, :] of the (L, N, D) tensor == last batch element here,
        #    then fused GRN + output Linear
        z = h[-1]                                                             # (L, D)
        out = self._grn_output(z)                                             # (L, O)
        return out.reshape(-1, self.output_length, self.output_size)

    # -- pure-JAX reference (eval mode) ---------------------------------------

    def reference(self, x):
        L, N, _ = x.shape
        D, H = self.d_model, self.num_heads
        hd = D // H
        h = x @ self.emb_w + self.emb_b + self.pe[:L][:, None, :]             # (L,N,D)
        h = jnp.transpose(h, (1, 0, 2))                                       # (N,L,D)
        ep = self.enc
        for l in range(self.num_layers):
            qkv = h @ ep["wqkv"][l] + ep["bqkv"][l]
            q, k, v = qkv[..., :D], qkv[..., D:2 * D], qkv[..., 2 * D:]
            qh = q.reshape(N, L, H, hd)
            kh = k.reshape(N, L, H, hd)
            vh = v.reshape(N, L, H, hd)
            s = jnp.einsum('nqhd,nkhd->nhqk', qh, kh) / math.sqrt(hd)
            a = jax.nn.softmax(s, axis=-1)
            attn = jnp.einsum('nhqk,nkhd->nqhd', a, vh).reshape(N, L, D)
            attn = attn @ ep["wo"][l] + ep["bo"][l]
            y = _layer_norm(h + attn, ep["g1"][l], ep["be1"][l])
            ffn = jnp.maximum(y @ ep["w1"][l] + ep["b1"][l], 0.0) @ ep["w2"][l] + ep["b2"][l]
            h = _layer_norm(y + ffn, ep["g2"][l], ep["be2"][l])
        z = h[-1]                                                             # (L, D)
        gp = self.grn
        t = z @ gp["w1"] + gp["b1"]
        t = jnp.where(t > 0, t, jnp.exp(jnp.minimum(t, 0.0)) - 1.0)
        t = t @ gp["w2"] + gp["b2"]
        glu = (1.0 / (1.0 + jnp.exp(-(z @ gp["wg1"] + gp["bg1"])))) * (z @ gp["wg2"] + gp["bg2"])
        y = _layer_norm(t + glu, gp["g"], gp["be"])
        out = y @ self.out_w + self.out_b
        return out.reshape(-1, self.output_length, self.output_size)


if __name__ == "__main__":
    key = jax.random.PRNGKey(0)
    kx, kp = jax.random.split(key)

    # small shapes consistent with the module: seq=8, batch=2, input=16, d_model=32
    L, N = 8, 2
    input_size, d_model, num_heads, num_layers = 16, 32, 4, 2
    output_size, output_length = 4, 3

    x = jax.random.normal(kx, (L, N, input_size), dtype=jnp.float32)
    model = TemporalFusionTransformer(input_size, output_size, output_length,
                                      num_layers, d_model, num_heads,
                                      dropout=0.1, key=kp)

    # eval-mode forward through the Pallas kernels
    out = jax.block_until_ready(model(x))
    assert out.shape == (L, output_length, output_size)

    # pure-JAX reference check
    ref = jax.block_until_ready(model.reference(x))
    err = float(jnp.max(jnp.abs(out - ref)))
    assert jnp.allclose(out, ref, atol=2e-3, rtol=2e-3), f"max abs err {err}"

    # exercise the training-mode fused embed+PE+dropout kernel once
    out_train = jax.block_until_ready(model(x, training=True, seed=123))
    assert out_train.shape == out.shape
    assert bool(jnp.all(jnp.isfinite(out_train)))

    print("KERNEL_OK")
</pallas_src>

<mosaic_0001>
module attributes {stable_mosaic.version = 11 : i64} {
  func.func @_embed_pe_kernel(%arg0: i32, %arg1: i32, %arg2: memref<1x8x16xf32, #tpu.memory_space<vmem>>, %arg3: memref<8x32xf32, #tpu.memory_space<vmem>>, %arg4: memref<16x32xf32, #tpu.memory_space<vmem>>, %arg5: memref<1x32xf32, #tpu.memory_space<vmem>>, %arg6: memref<1x8x32xf32, #tpu.memory_space<vmem>>) attributes {dimension_semantics = [#tpu.dimension_semantics<parallel>, #tpu.dimension_semantics<parallel>], iteration_bounds = array<i64: 2, 1>, scalar_prefetch = 0 : i64, scratch_operands = 0 : i64, tpu.core_type = #tpu.core_type<tc>, window_params = [{transform_indices = @transform_0, window_bounds = array<i64: 1, 8, 16>}, {transform_indices = @transform_1, window_bounds = array<i64: 8, 32>}, {pipeline_mode = #tpu.pipeline_mode<synchronous>, transform_indices = @transform_2, window_bounds = array<i64: 16, 32>}, {pipeline_mode = #tpu.pipeline_mode<synchronous>, transform_indices = @transform_3, window_bounds = array<i64: 1, 32>}, {transform_indices = @transform_4, window_bounds = array<i64: 1, 8, 32>}]} {
    %c0 = arith.constant 0 : index
    %c0_0 = arith.constant 0 : index
    %c0_1 = arith.constant 0 : index
    %0 = vector.load %arg2[%c0, %c0_0, %c0_1] : memref<1x8x16xf32, #tpu.memory_space<vmem>>, vector<1x8x16xf32>
    %1 = vector.shape_cast %0 : vector<1x8x16xf32> to vector<8x16xf32>
    %c0_2 = arith.constant 0 : index
    %c0_3 = arith.constant 0 : index
    %2 = vector.load %arg4[%c0_2, %c0_3] : memref<16x32xf32, #tpu.memory_space<vmem>>, vector<16x32xf32>
    %cst = arith.constant dense<0.000000e+00> : vector<8x32xf32>
    %3 = tpu.matmul %1, %2, %cst {dimension_numbers = #tpu.dot_dimension_numbers<[1], [0], [0], [1], [0, 0, 1, 1], [], []>} : vector<8x16xf32>, vector<16x32xf32>, vector<8x32xf32> -> vector<8x32xf32>
    %c0_4 = arith.constant 0 : index
    %c0_5 = arith.constant 0 : index
    %4 = vector.load %arg5[%c0_4, %c0_5] : memref<1x32xf32, #tpu.memory_space<vmem>>, vector<1x32xf32>
    %5 = vector.broadcast %4 : vector<1x32xf32> to vector<8x32xf32>
    %6 = arith.addf %3, %5 : vector<8x32xf32>
    %c0_6 = arith.constant 0 : index
    %c0_7 = arith.constant 0 : index
    %7 = vector.load %arg3[%c0_6, %c0_7] : memref<8x32xf32, #tpu.memory_space<vmem>>, vector<8x32xf32>
    %8 = arith.addf %6, %7 : vector<8x32xf32>
    %c0_8 = arith.constant 0 : index
    %c0_9 = arith.constant 0 : index
    %c0_10 = arith.constant 0 : index
    %9 = vector.load %arg6[%c0_8, %c0_9, %c0_10] : memref<1x8x32xf32, #tpu.memory_space<vmem>>, vector<1x8x32xf32>
    %10 = vector.shape_cast %9 : vector<1x8x32xf32> to vector<8x32xf32>
    %11 = vector.shape_cast %8 : vector<8x32xf32> to vector<1x8x32xf32>
    tpu.vector_store %arg6[%c0_8, %c0_9, %c0_10], %11 {strides = array<i32>} : memref<1x8x32xf32, #tpu.memory_space<vmem>>, vector<1x8x32xf32>,
    return
  }
  func.func @transform_0(%arg0: i32, %arg1: i32) -> (i32, i32, i32) {
    %c0_i32 = arith.constant 0 : i32
    %c0_i32_0 = arith.constant 0 : i32
    return %arg0, %arg1, %c0_i32 : i32, i32, i32
  }
  func.func @transform_1(%arg0: i32, %arg1: i32) -> (i32, i32) {
    %c0_i32 = arith.constant 0 : i32
    %c0_i32_0 = arith.constant 0 : i32
    return %arg1, %c0_i32 : i32, i32
  }
  func.func @transform_2(%arg0: i32, %arg1: i32) -> (i32, i32) {
    %c0_i32 = arith.constant 0 : i32
    %c0_i32_0 = arith.constant 0 : i32
    %c0_i32_1 = arith.constant 0 : i32
    return %c0_i32, %c0_i32_0 : i32, i32
  }
  func.func @transform_3(%arg0: i32, %arg1: i32) -> (i32, i32) {
    %c0_i32 = arith.constant 0 : i32
    %c0_i32_0 = arith.constant 0 : i32
    %c0_i32_1 = arith.constant 0 : i32
    return %c0_i32, %c0_i32_0 : i32, i32
  }
  func.func @transform_4(%arg0: i32, %arg1: i32) -> (i32, i32, i32) {
    %c0_i32 = arith.constant 0 : i32
    %c0_i32_0 = arith.constant 0 : i32
    return %arg0, %arg1, %c0_i32 : i32, i32, i32
  }
}

</mosaic_0001>

<bundles_post_ra>
// kernel: tpu_custom_call.1
= control target key start
LH: loop header
LB: loop body
LE: loop exit
PB: predicated region body
PF: predicated region fallthrough
CT: control target
= control target key end

     0   :  { %9 = vsyncpa [#allocation3], 0  ;;  %s1042_s0 = inlined_call_operand.hbm [shape: f32[2,8,16], index: 0, kind: input, shape index: {}]   ;;  %s1043_s1 = inlined_call_operand.hbm [shape: f32[8,32], index: 1, kind: input, shape index: {}]   ;;  %s1044_s2 = inlined_call_operand.hbm [shape: f32[16,32], index: 2, kind: input, shape index: {}]   ;;  %s1045_s3 = inlined_call_operand.vmem [shape: f32[1,32], index: 3, kind: input, shape index: {}]   ;;  %s1046_s4 = inlined_call_operand.hbm [shape: f32[2,8,32], index: 4, kind: output, shape index: {}]  }
   0x1   :  { %11 = vsyncpa [#allocation3 + $0x1], 0 }
   0x2   :  { %12 = vsyncpa [#allocation6], 0 }
   0x3   :  { %13 = vsyncpa [#allocation4], 0 }
   0x4   :  { %15 = vsyncpa [#allocation4 + $0x1], 0  ;;  %s796_s15 = smov 0   ;;  %s798_s16 = smov 0  }
   0x5   :  { %s800_s17 = smov 0   ;;  %s802_s18 = smov 0  }
   0x6   :  { %s804_s19 = smov 0   ;;  %s806_s20 = smov 0  }
   0x7 LB: > { %s468_s21 = sadd.s32 4294967295, %s760_s20   ;;  %s469_s22 = sadd.s32 4294967294, %s760_s20   ;;  %s760_s20 = sphi %s806_s20, %s21_s20   ;;  %s756_s19 = sphi %s804_s19, %s1069_s19   ;;  %s752_s18 = sphi %s802_s18, %s1068_s18   ;;  %s748_s17 = sphi %s800_s17, %s1067_s17   ;;  %s744_s16 = sphi %s798_s16, %s1066_s16   ;;  %s740_s15 = sphi %s796_s15, %s1065_s15  }
   0x8   : > { %p55_p0 = scmp.ne.s32.totalorder %s744_s16, %s740_s15  ;;  %p830_p1 = scmp.eq.s32.totalorder %s468_s21, 0 }
   0x9   : > { %p834_p2 = scmp.eq.s32.totalorder %s468_s21, 1  ;;  %p155_p3 = scmp.eq.s32.totalorder %s469_s22, 1 }
   0xa   : > { %s1051_s23 = scalar_select %p830_p1, 1, 0 }
   0xb   : > { %s1052_s24 = scalar_select %p834_p2, 1, 0 }
   0xc   : > { %p840_p4 = por %p830_p1, %p55_p0  ;;  %p470_p5 = scmp.ge.s32.totalorder %s760_s20, 1 }
   0xd   : > { %p845_p6 = por %p155_p3, %p55_p0  ;;  %p162_p7 = scmp.lt.s32.totalorder %s760_s20, 3 }
   0xe   : > { %s1053_s25 = scalar_select %p840_p4, 1, 0 }
   0xf   : > { %s1054_s26 = scalar_select %p845_p6, 1, 0 }
  0x10   : > { %p850_p8 = pnand %p470_p5, %p162_p7  ;;  %s762_s28 = smov [#allocation5]  }
  0x11   : > { %s177_s29 = sshll.u32 %s762_s28, 4  ;;  %s763_s30 = smov [#allocation7]   ;;  %s178_s29 = int_to_ptr.vmem [resolvable:$true] %s177_s29 }
  0x12   : > { %s1055_s27 = scalar_select %p850_p8, 1, 0 }
  0x13   : > { %p512_p10 = pneg %p850_p8  ;;  %s187_s5 = sshll.u32 %s763_s30, 4  ;;  %s863_s5 = int_to_ptr.vmem [resolvable:$true] %s187_s5 }
  0x14   : > { %s588_s9 = scalar_lea.hbm %s1043_s1, 128 }
  0x15   : > { %p859_p11 = pnand %p512_p10, %p830_p1  ;;  %p589_p12 = scmp.ne.s32.totalorder %s1043_s1, %s588_s9 }
  0x16   : > { %p595_p5 = scmp.lt.u32.totalorder %s588_s9, %s1043_s1 }
  0x17   : > { %p590_p13 = pneg %p859_p11 }
  0x19   : > { %p591_p0 = pnand %p590_p13, %p589_p12 }
  0x1b   : > { %p592_p3 = pneg %p591_p0 }
  0x1d   : > { %p597_p7 = pnand %p595_p5, %p592_p3 }
  0x1f   : > { %600 = shalt.err (!%p597_p7)
}
  0x20   : > { %s601_s14 = scalar_lea.vmem %s178_s29, 128  ;;  %p609_p1 = scmp.lt.s32.totalorder %s178_s29, %s178_s29 }
  0x21   : > { %p602_p10 = scmp.ne.s32.totalorder %s178_s29, %s601_s14  ;;  %p610_p4 = scmp.lt.s32.totalorder %s601_s14, %s601_s14 }
  0x23   : > { %p604_p9 = pnand %p602_p10, %p590_p13  ;;  %p611_p8 = por %p610_p4, %p609_p1 }
  0x25   : > { %p605_p6 = pneg %p604_p9 }
  0x27   : > { %p612_p2 = pnand %p611_p8, %p605_p6 }
  0x29   : > { %615 = shalt.err (!%p612_p2)
}
  0x2a   : > { %515 = dma.hbm_to_vmem [thread:$0]  (!%p859_p11), %s1043_s1, 128, %s178_s29, [#allocation6]  }
  0x2b   : > { %s616_s7 = scalar_lea.hbm %s1044_s2, 256 }
  0x2c   : > { %p617_p9 = scmp.ne.s32.totalorder %s1044_s2, %s616_s7  ;;  %p623_p2 = scmp.lt.u32.totalorder %s616_s7, %s1044_s2 }
  0x2e   : > { %p619_p1 = pnand %p617_p9, %p590_p13 }
  0x30   : > { %p620_p4 = pneg %p619_p1 }
  0x32   : > { %p625_p6 = pnand %p623_p2, %p620_p4 }
  0x34   : > { %628 = shalt.err (!%p625_p6)
}
  0x35   : > { %s629_s29 = scalar_lea.vmem %s863_s5, 256  ;;  %p637_p3 = scmp.lt.s32.totalorder %s863_s5, %s863_s5 }
  0x36   : > { %p630_p8 = scmp.ne.s32.totalorder %s863_s5, %s629_s29  ;;  %p638_p5 = scmp.lt.s32.totalorder %s629_s29, %s629_s29 }
  0x38   : > { %p632_p12 = pnand %p630_p8, %p590_p13  ;;  %p639_p7 = por %p638_p5, %p637_p3 }
  0x3a   : > { %p633_p0 = pneg %p632_p12 }
  0x3c   : > { %p640_p10 = pnand %p639_p7, %p633_p0 }
  0x3e   : > { %643 = shalt.err (!%p640_p10)
}
  0x3f   : > { %s764_s12 = smov 128   ;;  %s765_s13 = smov 8  }
  0x40   : > { %518 = dma.hbm_to_vmem [thread:$0]  (!%p859_p11), %s1044_s2, 256, %s863_s5, [#allocation6], %s764_s12, %s764_s12, %s765_s13  }
  0x41   : > { %s33_s22 = sadd.s32 1, %s756_s19  ;;  %s42_s28 = sadd.s32 1, %s748_s17 }
  0x42   : > { %p35_p13 = scmp.ge.s32.totalorder %s33_s22, 2  ;;  %p49_p9 = scmp.ne.s32.totalorder %s748_s17, %s744_s16 }
  0x43   : > { %p50_p1 = scmp.eq.s32.totalorder %s760_s20, 0  ;;  %p529_p4 = scmp.lt.s32.totalorder %s760_s20, 2 }
  0x44   : > { %s1071_s22 = smov (%p35_p13, %s33_s22), 0  ;;  %p1057_p6 = scmp.ne.s32.totalorder %s1052_s24, 0 }
  0x45   : > { %p51_p2 = por %p50_p1, %p49_p9  ;;  %s37_s6 = ssub.s32 %s756_s19, %s1071_s22 }
  0x46   : > { %p922_p8 = por %p1057_p6, %p49_p9  ;;  %s204_s7 = sand.u32 1, %s748_s17  }
  0x47   : > { %p40_p12 = scmp.eq.s32.totalorder %s37_s6, 0  ;;  %s474_s5 = sshll.u32 %s204_s7, 3 }
  0x48   : > { %s475_s8 = sshll.u32 %s756_s19, 7  ;;  %s208_s24 = scalar_lea.vmem [#allocation2], %s474_s5 }
  0x49   : > { %s931_s9 = scalar_select %p40_p12, %s748_s17, %s42_s28  }
  0x4a   : > { %s936_s29 = scalar_lea.hbm %s1042_s0, %s475_s8  ;;  %s216_s12 = sshll.u32 %s208_s24, 4  ;;  %s944_s12 = int_to_ptr.vmem [resolvable:$true] %s216_s12 }
  0x4b   : > { %p940_p11 = pnand %p529_p4, %p51_p2  ;;  %s205_s14 = scalar_lea.sflag [#allocation3], %s204_s7 }
  0x4c   : > { %s644_s21 = scalar_lea.hbm %s936_s29, 128  ;;  %s649_s5 = scalar_lea.hbm %s1042_s0, 256 }
  0x4d   : > { %p645_p0 = scmp.ne.s32.totalorder %s936_s29, %s644_s21  ;;  %p646_p3 = pneg %p940_p11 }
  0x4e   : > { %p650_p10 = scmp.lt.u32.totalorder %s936_s29, %s1042_s0  ;;  %p651_p13 = scmp.lt.u32.totalorder %s649_s5, %s644_s21 }
  0x4f   : > { %p647_p5 = pnand %p646_p3, %p645_p0  ;;  %p653_p1 = scmp.lt.u32.totalorder %s644_s21, %s936_s29 }
  0x50   : > { %p652_p9 = por %p651_p13, %p650_p10 }
  0x51   : > { %p648_p7 = pneg %p647_p5 }
  0x52   : > { %p654_p4 = por %p653_p1, %p652_p9 }
  0x54   : > { %p655_p2 = pnand %p654_p4, %p648_p7 }
  0x56   : > { %658 = shalt.err (!%p655_p2)
}
  0x57   : > { %s659_s7 = scalar_lea.vmem %s944_s12, 128  ;;  %s766_s11 = smov [#allocation2]  }
  0x58   : > { %p660_p6 = scmp.ne.s32.totalorder %s944_s12, %s659_s7  ;;  %s664_s24 = sshll.u32 %s766_s11, 4  ;;  %s665_s24 = int_to_ptr.vmem [resolvable:$false] %s664_s24 }
  0x59   : > { %s666_s28 = scalar_lea.vmem %s665_s24, 256  ;;  %p667_p5 = scmp.lt.s32.totalorder %s944_s12, %s665_s24 }
  0x5a   : > { %p662_p12 = pnand %p660_p6, %p646_p3  ;;  %p668_p10 = scmp.lt.s32.totalorder %s666_s28, %s659_s7 }
  0x5c   : > { %p663_p0 = pneg %p662_p12  ;;  %p669_p13 = por %p668_p10, %p667_p5 }
  0x5e   : > { %p670_p9 = pnand %p669_p13, %p663_p0 }
  0x60   : > { %673 = shalt.err (!%p670_p9)
}
  0x61   : > { %522 = dma.hbm_to_vmem [thread:$0]  (!%p940_p11), %s936_s29, 128, %s944_s12, %s205_s14  }
  0x62   : > { %p1060_p7 = scmp.ne.s32.totalorder %s1055_s27, 0 }
  0x63   : > { %s974_s21 = sand.u32 (!%p1060_p7), 1, %s744_s16   ;;  %p1061_p3 = scmp.ne.s32.totalorder (!%p1060_p7), %s1053_s25, 0 }
  0x64   : > { %225 = sbr.rel (%p1060_p7) target bundleno = 348 (0x15c), region = 36  ;;  %s477_s6 = sshll.u32 (!%p1060_p7), %s974_s21, 3 }
  0x65   : > { %s228_s5 = scalar_lea.sflag (!%p1060_p7), [#allocation3], %s974_s21  ;;  %s231_s8 = scalar_lea.vmem (!%p1060_p7), [#allocation2], %s477_s6 }
  0x6b   : > { %727 = dma.done.wait (%p1061_p3), %s228_s5, 128  }
  0x6c   : > { %729 = vsyncadd (%p1061_p3), %s228_s5, 4294967168  ;;  %p1062_p1 = scmp.ne.s32.totalorder %s1051_s23, 0 }
  0x6e   : > { %731 = dma.done.wait (%p1062_p1), [#allocation6], 384  }
  0x6f   : > { %733 = vsyncadd (%p1062_p1), [#allocation6], 4294966912  ;;  %v767_v0 = vmov 0.0|0.0   ;;  %vm768_vm0 = vmmov 0   ;;  %v769_v1 = vmov 0.0   ;;  %v265_v2 = vld [vmem:[#allocation7] sm:$0xff] }
  0x70   : > { %497 = vmatprep.subr.bf16.mxu0 %v767_v0  ;;  %494 = vmatprep.mubr.msk.f32.mxu0 %vm768_vm0, %v769_v1  ;;  %v266_v3 = vld [vmem:[#allocation7 + $0x8] sm:$0xff]  ;;  %vm274_vm1 = vcmask 130048   ;;  %v348_v8 = vld [vmem:[#allocation5] sm:$0xff]  ;;  %s484_s23 = sshll.u32 %s752_s18, 7  ;;  %s263_s29 = scalar_lea.vmem [#allocation8], %s477_s6  ;;  %vm350_vm2 = vcmask 261120  }
  0x71   : > { %v498_v4 = vpack.c.bf16 %v266_v3, %v265_v2  ;;  %v264_v5 = vld [vmem:[%s231_s8] sm:$0xff]  ;;  %s367_s12 = sshll.u32 %s263_s29, 4  ;;  %s993_s10 = scalar_lea.hbm %s1046_s4, %s484_s23  ;;  %s995_s12 = int_to_ptr.vmem [resolvable:$true] %s367_s12 }
  0x72   : > { %v481_v6 = vld [vmem:[%s1045_s3] ss:$0 sm:$0xff]  ;;  %s353_s7 = scalar_lea.sflag [#allocation4], %s974_s21  ;;  %s674_s11 = scalar_lea.vmem %s995_s12, 128 }
  0x73   : > { %499 = vmatpush3.bf16.msra.mxu0 %v498_v4  ;;  %p675_p11 = scmp.ne.s32.totalorder %s995_s12, %s674_s11  ;;  %s770_s18 = smov [#allocation8]  }
  0x74   : > { %s678_s24 = sshll.u32 %s770_s18, 4  ;;  %s679_s24 = int_to_ptr.vmem [resolvable:$false] %s678_s24 }
  0x75   : > { %p676_p4 = pnand %p675_p11, %p922_p8  ;;  %s680_s28 = scalar_lea.vmem %s679_s24, 256 }
  0x76   : > { %495 = vmatmul.mubr.msk.f32.vlgmr.msra.gmra.mrb[0].mxu0 %vm274_vm1, %v264_v5  ;;  %p681_p6 = scmp.lt.s32.totalorder %s995_s12, %s679_s24  ;;  %p682_p12 = scmp.lt.s32.totalorder %s680_s28, %s674_s11 }
  0x77   : > { %p677_p2 = pneg %p676_p4 }
  0x78   : > { %p683_p0 = por %p682_p12, %p681_p6 }
  0x7a   : > { %p684_p5 = pnand %p683_p0, %p677_p2 }
 0x149   : > { %v344_v7 = vpop.f32.mrb[0].mxu0 }
 0x14a   : > { %v345_v9 = vadd.f32 %v481_v6, %v344_v7  ;;  %v496_v10 = vpop.f32.mrb[1].mxu0 }
 0x14c   : > { %v349_v11 = vadd.f32 %v348_v8, %v345_v9 }
 0x14e   : > { %351 = vst.msk [vmem:[%s263_s29] sm:$0xff] %vm350_vm2, %v349_v11 }
 0x14f   : > { %687 = shalt.err (!%p684_p5)
}
 0x150   : > { %s688_s21 = scalar_lea.hbm %s993_s10, 128  ;;  %s692_s8 = scalar_lea.hbm %s1046_s4, 256 }
 0x151   : > { %p689_p10 = scmp.ne.s32.totalorder %s993_s10, %s688_s21  ;;  %p693_p7 = scmp.lt.u32.totalorder %s993_s10, %s1046_s4 }
 0x152   : > { %p694_p3 = scmp.lt.u32.totalorder %s692_s8, %s688_s21  ;;  %p696_p11 = scmp.lt.u32.totalorder %s688_s21, %s993_s10 }
 0x153   : > { %p690_p13 = pnand %p689_p10, %p922_p8 }
 0x154   : > { %p695_p1 = por %p694_p3, %p693_p7 }
 0x155   : > { %p691_p9 = pneg %p690_p13 }
 0x156   : > { %p697_p4 = por %p696_p11, %p695_p1 }
 0x158   : > { %p698_p2 = pnand %p697_p4, %p691_p9 }
 0x15a   : > { %701 = shalt.err (!%p698_p2)
}
 0x15b   : > { %510 = dma.vmem_to_hbm [thread:$0]  (%p922_p8), %s995_s12, 128, %s993_s10, %s353_s7  }
 0x15c PF: > { %s379_s23 = sand.u32 1, %s740_s15   ;;  %p1063_p6 = scmp.ne.s32.totalorder %s1054_s26, 0 }
 0x15d   : > { %p1064_p12 = scmp.ge.s32.totalorder %s760_s20, 2  ;;  %s380_s29 = scalar_lea.sflag [#allocation4], %s379_s23 }
 0x15f   : > { %p524_p0 = pnand %p1064_p12, %p1063_p6 }
 0x161   : > { %735 = dma.done.wait (!%p524_p0), %s380_s29, 128  }
 0x162   : > { %737 = vsyncadd (!%p524_p0), %s380_s29, 4294967168  ;;  %s21_s20 = sadd.s32 1, %s760_s20   ;;  %s1065_s15 = smov %s744_s16 }
 0x163   : > { %p18_p5 = scmp.ge.s32.totalorder %s21_s20, 4   ;;  %s1066_s16 = smov %s748_s17 }
 0x164   : > { %s1067_s17 = smov %s931_s9  ;;  %s1068_s18 = smov %s756_s19 }
 0x165   : > { %s1069_s19 = smov %s1071_s22  ;;  %20 = sbr.rel (!%p18_p5) target bundleno = 7 (0x7), region = 90 }
 0x16c   :  { %385 = vsyncpa [#allocation3], 1 }
 0x16d   :  { %387 = vsyncpa [#allocation3 + $0x1], 1 }
 0x16e   :  { %388 = vsyncpa [#allocation6], 1 }
 0x16f   :  { %389 = vsyncpa [#allocation4], 1 }
 0x170   :  { %391 = vsyncpa [#allocation4 + $0x1], 1 }

</bundles_post_ra>
